<compile_context>
chip_gen: v7x
topology: tpu7x:2x2x1
jax: 0.10.0
libtpu: 0.0.40
codegen_flags: <defaults>
</compile_context>

<pallas_src>
import jax
import jax.numpy as jnp
from jax.experimental import pallas as pl
from jax.experimental.pallas import tpu as pltpu


_MAX_OUTSTANDING_DMAS = 4      # 2-4 in-flight DMAs keep the engines saturated
_MIN_CHUNK_BYTES = 1 << 20     # don't split copies below ~1 MiB per chunk


def identity(x):
    """Faithful nn.Identity: forward(x) = x.  No kernel, no data movement."""
    return x


def _make_hbm_copy_kernel(rows, chunk_rows, num_chunks):
    """Build a kernel doing a chunked HBM->HBM DMA copy.

    All chunk boundaries are static Python ints, so the loop fully unrolls at
    trace time: `num_chunks` DMAs are started back-to-back (all in flight),
    then all are waited on.
    """

    def kernel(x_hbm, o_hbm, sem):
        copies = []
        for i in range(num_chunks):                      # static unroll
            start = i * chunk_rows
            size = min(chunk_rows, rows - start)         # last chunk may be ragged
            cp = pltpu.make_async_copy(
                x_hbm.at[pl.ds(start, size), :],
                o_hbm.at[pl.ds(start, size), :],
                sem.at[i],
            )
            cp.start()
            copies.append(cp)
        for cp in copies:
            cp.wait()

    return kernel


def identity_pallas_copy(x, *, max_outstanding_dmas=_MAX_OUTSTANDING_DMAS):
    """Explicit device copy of `x` via chunked HBM->HBM async DMA in Pallas."""
    shape = x.shape
    dtype = x.dtype
    total = int(x.size)
    if total == 0:
        return x  # nothing to copy

    itemsize = jnp.dtype(dtype).itemsize
    total_bytes = total * itemsize

    # Contiguous, layout-only 2-D view so the copy can be chunked along rows.
    cols = 0
    for c in (4096, 2048, 1024, 512, 256, 128):
        if total % c == 0:
            cols = c
            break
    if cols:
        rows = total // cols
    else:
        # Not 128-divisible: keep one contiguous row and copy it with a single
        # DMA (rows == 1 forces num_chunks == 1 below).  Still contiguous,
        # still at the HBM roofline; no masked partial stores anywhere.
        rows, cols = 1, total
    x2d = x.reshape(rows, cols)

    # 1..max_outstanding_dmas chunks, each at least ~_MIN_CHUNK_BYTES.
    num_chunks = max(1, min(max_outstanding_dmas, rows,
                            total_bytes // _MIN_CHUNK_BYTES))
    chunk_rows = pl.cdiv(rows, num_chunks)
    num_chunks = pl.cdiv(rows, chunk_rows)   # re-derive after rounding up

    out2d = pl.pallas_call(
        _make_hbm_copy_kernel(rows, chunk_rows, num_chunks),
        out_shape=jax.ShapeDtypeStruct((rows, cols), dtype),
        in_specs=[pl.BlockSpec(memory_space=pl.ANY)],   # raw HBM ref, no auto-DMA
        out_specs=pl.BlockSpec(memory_space=pl.ANY),    # output stays in HBM
        scratch_shapes=[pltpu.SemaphoreType.DMA((num_chunks,))],
    )(x2d)
    return out2d.reshape(shape)


if __name__ == "__main__":
    key = jax.random.PRNGKey(0)

    # Small NCHW input consistent with typical usage of the layer.
    x = jax.random.normal(key, (2, 4, 16, 16), dtype=jnp.float32)

    # 1) Faithful nn.Identity path: zero-cost, returns the same array object.
    y = identity(x)
    assert y is x

    # 2) Explicit Pallas copy (single full-array HBM->HBM DMA at this size).
    y_copy = jax.block_until_ready(identity_pallas_copy(x))
    assert y_copy.shape == x.shape and y_copy.dtype == x.dtype
    assert bool(jnp.all(y_copy == x)), "identity (pallas copy) mismatch"

    # 3) Exercise the multi-DMA path: 4 MiB f32 -> (256, 4096) slab, split into
    #    four 64-row (1 MiB) chunks, all four DMAs in flight before any wait.
    x_big = jax.random.normal(jax.random.PRNGKey(0), (1024, 1024), dtype=jnp.float32)
    y_big = jax.block_until_ready(identity_pallas_copy(x_big))
    assert y_big.shape == x_big.shape and y_big.dtype == x_big.dtype
    assert bool(jnp.all(y_big == x_big)), "identity (multi-DMA pallas copy) mismatch"

    # 4) Non-128-divisible element count -> single contiguous full-array DMA.
    x_odd = jax.random.normal(jax.random.PRNGKey(0), (7, 9), dtype=jnp.float32)
    y_odd = jax.block_until_ready(identity_pallas_copy(x_odd))
    assert y_odd.shape == x_odd.shape and y_odd.dtype == x_odd.dtype
    assert bool(jnp.all(y_odd == x_odd)), "identity (odd-size pallas copy) mismatch"

    # 5) bf16 works identically (the DMA copy is dtype / bit-pattern agnostic).
    x_bf16 = jax.random.normal(jax.random.PRNGKey(0), (2, 4, 16, 16)).astype(jnp.bfloat16)
    y_bf16 = jax.block_until_ready(identity_pallas_copy(x_bf16))
    assert bool(jnp.all(y_bf16 == x_bf16)), "identity (bf16 pallas copy) mismatch"

    print("KERNEL_OK")
</pallas_src>

<mosaic_0001>
module attributes {stable_mosaic.version = 11 : i64} {
  func.func @kernel(%arg0: memref<1x2048xf32, #tpu.memory_space<any>>, %arg1: memref<1x2048xf32, #tpu.memory_space<any>>, %arg2: memref<1x!tpu.dma_semaphore, #tpu.memory_space<semaphore_mem>>) attributes {dimension_semantics = [], scalar_prefetch = 0 : i64, scratch_operands = 1 : i64, tpu.core_type = #tpu.core_type<tc>} {
    %c0_i32 = arith.constant 0 : i32
    %c0_i32_0 = arith.constant 0 : i32
    %c0_i32_1 = arith.constant 0 : i32
    %0 = tpu.memref_slice %arg0[%c0_i32_0, %c0_i32_1] : memref<1x2048xf32, #tpu.memory_space<any>> -> memref<1x2048xf32, #tpu.memory_space<any>>
    %c0_i32_2 = arith.constant 0 : i32
    %c0_i32_3 = arith.constant 0 : i32
    %1 = tpu.memref_slice %arg1[%c0_i32_2, %c0_i32_3] : memref<1x2048xf32, #tpu.memory_space<any>> -> memref<1x2048xf32, #tpu.memory_space<any>>
    %2 = tpu.memref_slice %arg2[%c0_i32] : memref<1x!tpu.dma_semaphore, #tpu.memory_space<semaphore_mem>> -> memref<1x!tpu.dma_semaphore, #tpu.memory_space<semaphore_mem>>
    %3 = tpu.memref_squeeze %2 : memref<1x!tpu.dma_semaphore, #tpu.memory_space<semaphore_mem>> -> memref<!tpu.dma_semaphore, #tpu.memory_space<semaphore_mem>>
    tpu.enqueue_dma source(%0 : memref<1x2048xf32, #tpu.memory_space<any>>) target(%1 : memref<1x2048xf32, #tpu.memory_space<any>>) target_semaphore(%3 : memref<!tpu.dma_semaphore, #tpu.memory_space<semaphore_mem>>)
    %c0_i32_4 = arith.constant 0 : i32
    %c0_i32_5 = arith.constant 0 : i32
    %c0_i32_6 = arith.constant 0 : i32
    %4 = tpu.memref_slice %arg0[%c0_i32_5, %c0_i32_6] : memref<1x2048xf32, #tpu.memory_space<any>> -> memref<1x2048xf32, #tpu.memory_space<any>>
    %c0_i32_7 = arith.constant 0 : i32
    %c0_i32_8 = arith.constant 0 : i32
    %5 = tpu.memref_slice %arg1[%c0_i32_7, %c0_i32_8] : memref<1x2048xf32, #tpu.memory_space<any>> -> memref<1x2048xf32, #tpu.memory_space<any>>
    %6 = tpu.memref_slice %arg2[%c0_i32_4] : memref<1x!tpu.dma_semaphore, #tpu.memory_space<semaphore_mem>> -> memref<1x!tpu.dma_semaphore, #tpu.memory_space<semaphore_mem>>
    %7 = tpu.memref_squeeze %6 : memref<1x!tpu.dma_semaphore, #tpu.memory_space<semaphore_mem>> -> memref<!tpu.dma_semaphore, #tpu.memory_space<semaphore_mem>>
    tpu.wait_dma2 semaphore(%7 : memref<!tpu.dma_semaphore, #tpu.memory_space<semaphore_mem>>) src(%4 : memref<1x2048xf32, #tpu.memory_space<any>>) dst(%5 : memref<1x2048xf32, #tpu.memory_space<any>>)
    return
  }
}

</mosaic_0001>

<bundles_post_ra>
// kernel: tpu_custom_call.1
= control target key start
LH: loop header
LB: loop body
LE: loop exit
PB: predicated region body
PF: predicated region fallthrough
CT: control target
= control target key end

     0   :  { %s34_s6 = smov [#allocation2]   ;;  %s35_s7 = smov [#allocation3]   ;;  %s53_s0 = inlined_call_operand.hbm [shape: f32[1,2048], index: 0, kind: input, shape index: {}]   ;;  %s54_s1 = inlined_call_operand.hbm [shape: f32[1,2048], index: 1, kind: output, shape index: {}]  }
   0x1   :  { %s36_s8 = smov 0  }
   0x2   :  { %18 = dma.general %s53_s0, 256, %s54_s1, %s34_s6, %s35_s7, [#allocation4], %s36_s8, 0  }
   0x3   :  { %32 = dma.done.wait [#allocation2], 256 }
   0x4   :  { %33 = vsyncadd [#allocation2], 4294967040 }
   0x5   :  { %22 = vsyncmov [#allocation2] }
   0x8   :  { %s23_s13 = vpop.sfrf %22 }
   0x9   :  { %p28_p0 = scmp.ne.s32.totalorder %s23_s13, 0 }
   0xb   :  { %27 = shalt.err (%p28_p0)  }

</bundles_post_ra>
